<compile_context>
chip_gen: v6e
topology: v6e:2x2x1
jax: 0.10.0
libtpu: 0.0.40
codegen_flags: <defaults>
</compile_context>

<pallas_src>
import functools

import jax
import jax.numpy as jnp
from jax.experimental import pallas as pl
from jax.experimental.pallas import tpu as pltpu

MARGIN = 1.0


def _round_up(x, m):
    return ((x + m - 1) // m) * m


def _tpu_generation_info():
    """Best-effort (vmem_capacity_bytes, tensorcores_per_chip)."""
    vmem_cap = 64 << 20        # conservative default (v7x per-TC VMEM)
    num_tc = 1                 # conservative default (v5e/v6e)
    try:
        info = pltpu.get_tpu_info()
        vmem_cap = int(getattr(info, "vmem_capacity_bytes", vmem_cap))
    except Exception:
        pass
    try:
        kind = jax.devices()[0].device_kind.lower()
        if "v7" in kind or "7x" in kind:
            num_tc = 2         # v7x: 2 TensorCores per chip
    except Exception:
        pass
    return vmem_cap, num_tc


def _triplet_loss_kernel(a_ref, p_ref, n_ref, out_ref, acc_ref, *, margin, batch,
                         tile_b, steps_per_shard):
    c = pl.program_id(0)          # shard axis ("parallel"; 2 TCs on v7x)
    i = pl.program_id(1)          # batch-tile axis ("arbitrary"; reduction)

    @pl.when(i == 0)
    def _():
        acc_ref[...] = jnp.zeros_like(acc_ref)

    a = a_ref[...].astype(jnp.float32)
    p = p_ref[...].astype(jnp.float32)
    n = n_ref[...].astype(jnp.float32)

    # Fused lane (XLU) reduction: sum((a-p)^2 - (a-n)^2, axis=1).
    diff = (a - p) * (a - p) - (a - n) * (a - n)
    per_row = jnp.sum(diff, axis=1, keepdims=True) + margin        # (tile_b, 1)
    losses = jnp.maximum(per_row, 0.0)

    # Mask rows outside the real batch (padded last tile and the clamped
    # duplicate tile the 2nd shard may see when tiles don't split evenly).
    global_tile = c * steps_per_shard + i
    row = global_tile * tile_b + jax.lax.broadcasted_iota(jnp.int32, (tile_b, 1), 0)
    acc_ref[...] += jnp.where(row < batch, losses, 0.0)

    # Deferred scalar reduction: only one sublane-reduce + (1,1) store per shard.
    @pl.when(i == steps_per_shard - 1)
    def _():
        out_ref[...] = jnp.sum(acc_ref[...], axis=0, keepdims=True)


def _triplet_loss_jax(anchor, positive, negative, margin, size_average):
    a = anchor.astype(jnp.float32)
    p = positive.astype(jnp.float32)
    n = negative.astype(jnp.float32)
    dp = jnp.sum((a - p) ** 2, axis=1)
    dn = jnp.sum((a - n) ** 2, axis=1)
    losses = jnp.maximum(dp - dn + margin, 0.0)
    return jnp.mean(losses) if size_average else jnp.sum(losses)


def triplet_loss(anchor, positive, negative, margin=MARGIN, size_average=True,
                 tile_b=None):
    """Pallas TPU implementation of TripletLoss.forward."""
    assert anchor.shape == positive.shape == negative.shape
    assert anchor.ndim == 2
    B, D = anchor.shape
    itemsize = jnp.dtype(anchor.dtype).itemsize
    # sublane packing: 8 rows for f32, 16 for bf16, 32 for int8/fp8
    sublane = max(8, 32 // max(int(itemsize), 1))

    # Lane-misaligned / tiny problems: the padded VMEM tile + strided DMA make
    # the kernel path strictly worse than XLA's own fusion -> plain JAX.
    if D % 128 != 0 or B < sublane:
        return _triplet_loss_jax(anchor, positive, negative, margin, size_average)

    vmem_cap, num_tc = _tpu_generation_info()

    # Per-row VMEM footprint: 3 inputs x 2 pipeline buffers of input dtype,
    # plus ~4 f32 elementwise temporaries (upcasts of a/p/n and diff).
    per_row_bytes = 6 * D * itemsize + 16 * D
    budget = max(int(0.55 * vmem_cap) - (4 << 20), per_row_bytes * sublane)
    tile_b_max = max(sublane, (budget // per_row_bytes) // sublane * sublane)

    if tile_b is None:
        tile_b = tile_b_max
    tile_b = max(sublane, min(int(tile_b), tile_b_max, 4096, _round_up(B, sublane)))
    tile_b = max(sublane, (tile_b // sublane) * sublane)

    num_tiles = pl.cdiv(B, tile_b)
    # Use the 2nd TensorCore only where it exists (v7x); on single-TC chips a
    # fake split is just a sequential outer loop plus a wasted duplicate-tile
    # DMA when num_tiles is odd.
    num_shards = 2 if (num_tc >= 2 and num_tiles > 1) else 1
    steps = pl.cdiv(num_tiles, num_shards)

    def in_map(c, i):
        # Clamp so the trailing duplicate tile of shard 1 never indexes out of
        # bounds; its rows are masked to zero inside the kernel.
        return (jnp.minimum(c * steps + i, num_tiles - 1), 0)

    kernel = functools.partial(
        _triplet_loss_kernel, margin=float(margin), batch=B, tile_b=tile_b,
        steps_per_shard=steps)

    # VMEM accounting: pipelined I/O + f32 temporaries + scratch + slack.
    vmem_need = (3 * 2 * tile_b * D * itemsize     # double-buffered inputs
                 + 4 * tile_b * D * 4              # f32 upcasts / temporaries
                 + tile_b * 4                      # scratch accumulator
                 + (2 << 20))                      # slack
    vmem_limit = int(min(max(vmem_need, 32 << 20), (vmem_cap * 3) // 4))

    cost = pl.CostEstimate(
        flops=8 * B * D,
        transcendentals=0,
        bytes_accessed=3 * B * D * itemsize + num_shards * 4)

    partials = pl.pallas_call(
        kernel,
        out_shape=jax.ShapeDtypeStruct((num_shards, 1), jnp.float32),
        grid=(num_shards, steps),
        in_specs=[
            pl.BlockSpec((tile_b, D), in_map),
            pl.BlockSpec((tile_b, D), in_map),
            pl.BlockSpec((tile_b, D), in_map),
        ],
        out_specs=pl.BlockSpec((1, 1), lambda c, i: (c, 0)),
        scratch_shapes=[pltpu.VMEM((tile_b, 1), jnp.float32)],
        compiler_params=pltpu.CompilerParams(
            dimension_semantics=("parallel", "arbitrary"),
            vmem_limit_bytes=vmem_limit),
        cost_estimate=cost,
    )(anchor, positive, negative)

    total = jnp.sum(partials)
    return total / B if size_average else total


def triplet_loss_reference(anchor, positive, negative, margin=MARGIN, size_average=True):
    dp = jnp.sum((anchor - positive) ** 2, axis=1)
    dn = jnp.sum((anchor - negative) ** 2, axis=1)
    losses = jnp.maximum(dp - dn + margin, 0.0)
    return jnp.mean(losses) if size_average else jnp.sum(losses)


if __name__ == "__main__":
    key = jax.random.PRNGKey(0)

    # Case 1: lane-aligned small batch -> kernel path, single tile/shard.
    k1, k2, k3, key = jax.random.split(key, 4)
    B, D = 16, 128
    a = jax.random.normal(k1, (B, D), dtype=jnp.float32)
    p = jax.random.normal(k2, (B, D), dtype=jnp.float32)
    n = jax.random.normal(k3, (B, D), dtype=jnp.float32)

    loss = jax.block_until_ready(triplet_loss(a, p, n, MARGIN, True))
    ref = triplet_loss_reference(a, p, n, MARGIN, True)
    assert jnp.allclose(loss, ref, rtol=1e-5, atol=1e-5), (loss, ref)

    # Case 2: non-divisible batch with a forced small tile -> exercises the
    # multi-tile scratch accumulator, deferred final reduce, padded-row
    # masking, and (on v7x) the 2-shard megacore split.
    k1, k2, k3, key = jax.random.split(key, 4)
    B2, D2 = 50, 128
    a2 = jax.random.normal(k1, (B2, D2), dtype=jnp.float32)
    p2 = jax.random.normal(k2, (B2, D2), dtype=jnp.float32)
    n2 = jax.random.normal(k3, (B2, D2), dtype=jnp.float32)

    loss2 = jax.block_until_ready(triplet_loss(a2, p2, n2, MARGIN, True, tile_b=16))
    ref2 = triplet_loss_reference(a2, p2, n2, MARGIN, True)
    assert jnp.allclose(loss2, ref2, rtol=1e-5, atol=1e-5), (loss2, ref2)

    loss3 = jax.block_until_ready(triplet_loss(a2, p2, n2, MARGIN, False, tile_b=16))
    ref3 = triplet_loss_reference(a2, p2, n2, MARGIN, False)
    assert jnp.allclose(loss3, ref3, rtol=1e-5, atol=1e-4), (loss3, ref3)

    # Case 3: tiny lane-misaligned feature dim -> plain-JAX fallback path.
    k1, k2, k3, key = jax.random.split(key, 4)
    B3, D3 = 8, 32
    a3 = jax.random.normal(k1, (B3, D3), dtype=jnp.float32)
    p3 = jax.random.normal(k2, (B3, D3), dtype=jnp.float32)
    n3 = jax.random.normal(k3, (B3, D3), dtype=jnp.float32)

    loss4 = jax.block_until_ready(triplet_loss(a3, p3, n3, MARGIN, True))
    ref4 = triplet_loss_reference(a3, p3, n3, MARGIN, True)
    assert jnp.allclose(loss4, ref4, rtol=1e-5, atol=1e-5), (loss4, ref4)

    print("KERNEL_OK")
</pallas_src>

<mosaic_0001>
module attributes {stable_mosaic.version = 11 : i64} {
  func.func @_triplet_loss_kernel(%arg0: i32, %arg1: i32, %arg2: memref<16x128xf32, #tpu.memory_space<vmem>>, %arg3: memref<16x128xf32, #tpu.memory_space<vmem>>, %arg4: memref<16x128xf32, #tpu.memory_space<vmem>>, %arg5: memref<1x1xf32, #tpu.memory_space<vmem>>, %arg6: memref<16x1xf32, #tpu.memory_space<vmem>>) attributes {dimension_semantics = [#tpu.dimension_semantics<parallel>, #tpu.dimension_semantics<arbitrary>], iteration_bounds = array<i64: 1, 1>, scalar_prefetch = 0 : i64, scratch_operands = 1 : i64, tpu.core_type = #tpu.core_type<tc>, window_params = [{transform_indices = @transform_0, window_bounds = array<i64: 16, 128>}, {transform_indices = @transform_1, window_bounds = array<i64: 16, 128>}, {transform_indices = @transform_2, window_bounds = array<i64: 16, 128>}, {transform_indices = @transform_3, window_bounds = array<i64: 1, 1>}]} {
    %c0_i32 = arith.constant 0 : i32
    %0 = arith.cmpi eq, %arg1, %c0_i32 : i32
    %1 = arith.extui %0 : i1 to i32
    %c0_i32_0 = arith.constant 0 : i32
    %2 = arith.cmpi ne, %1, %c0_i32_0 : i32
    scf.if %2 {
      %cst_16 = arith.constant 0.000000e+00 : f32
      %35 = vector.broadcast %cst_16 : f32 to vector<16x1xf32>
      %c0_17 = arith.constant 0 : index
      %c0_18 = arith.constant 0 : index
      %36 = vector.load %arg6[%c0_17, %c0_18] : memref<16x1xf32, #tpu.memory_space<vmem>>, vector<16x1xf32>
      tpu.vector_store %arg6[%c0_17, %c0_18], %35 {strides = array<i32>} : memref<16x1xf32, #tpu.memory_space<vmem>>, vector<16x1xf32>,
    } else {
    }
    %c0 = arith.constant 0 : index
    %c0_1 = arith.constant 0 : index
    %3 = vector.load %arg2[%c0, %c0_1] : memref<16x128xf32, #tpu.memory_space<vmem>>, vector<16x128xf32>
    %c0_2 = arith.constant 0 : index
    %c0_3 = arith.constant 0 : index
    %4 = vector.load %arg3[%c0_2, %c0_3] : memref<16x128xf32, #tpu.memory_space<vmem>>, vector<16x128xf32>
    %c0_4 = arith.constant 0 : index
    %c0_5 = arith.constant 0 : index
    %5 = vector.load %arg4[%c0_4, %c0_5] : memref<16x128xf32, #tpu.memory_space<vmem>>, vector<16x128xf32>
    %6 = arith.subf %3, %4 : vector<16x128xf32>
    %7 = arith.subf %3, %4 : vector<16x128xf32>
    %8 = arith.mulf %6, %7 : vector<16x128xf32>
    %9 = arith.subf %3, %5 : vector<16x128xf32>
    %10 = arith.subf %3, %5 : vector<16x128xf32>
    %11 = arith.mulf %9, %10 : vector<16x128xf32>
    %12 = arith.subf %8, %11 : vector<16x128xf32>
    %cst = arith.constant dense<0.000000e+00> : vector<16xf32>
    %13 = vector.multi_reduction <add>, %12, %cst [1] : vector<16x128xf32> to vector<16xf32>
    %14 = vector.shape_cast %13 : vector<16xf32> to vector<16x1xf32>
    %cst_6 = arith.constant 1.000000e+00 : f32
    %15 = vector.broadcast %cst_6 : f32 to vector<16x1xf32>
    %16 = arith.addf %14, %15 : vector<16x1xf32>
    %cst_7 = arith.constant 0.000000e+00 : f32
    %17 = vector.broadcast %cst_7 : f32 to vector<16x1xf32>
    %18 = arith.maximumf %16, %17 : vector<16x1xf32>
    %c1_i32 = arith.constant 1 : i32
    %19 = arith.muli %arg0, %c1_i32 : i32
    %20 = arith.addi %19, %arg1 : i32
    %c16_i32 = arith.constant 16 : i32
    %21 = arith.muli %20, %c16_i32 : i32
    %22 = tpu.iota {dimensions = array<i32: 0>} : vector<16x1xi32>
    %23 = vector.broadcast %21 : i32 to vector<16x1xi32>
    %24 = arith.addi %23, %22 : vector<16x1xi32>
    %c0_8 = arith.constant 0 : index
    %c0_9 = arith.constant 0 : index
    %25 = vector.load %arg6[%c0_8, %c0_9] : memref<16x1xf32, #tpu.memory_space<vmem>>, vector<16x1xf32>
    %c16_i32_10 = arith.constant 16 : i32
    %26 = vector.broadcast %c16_i32_10 : i32 to vector<16x1xi32>
    %27 = arith.cmpi slt, %24, %26 : vector<16x1xi32>
    %cst_11 = arith.constant 0.000000e+00 : f32
    %28 = vector.broadcast %cst_11 : f32 to vector<16x1xf32>
    %29 = arith.select %27, %18, %28 : vector<16x1xi1>, vector<16x1xf32>
    %30 = arith.addf %25, %29 : vector<16x1xf32>
    %c0_12 = arith.constant 0 : index
    %c0_13 = arith.constant 0 : index
    %31 = vector.load %arg6[%c0_12, %c0_13] : memref<16x1xf32, #tpu.memory_space<vmem>>, vector<16x1xf32>
    tpu.vector_store %arg6[%c0_12, %c0_13], %30 {strides = array<i32>} : memref<16x1xf32, #tpu.memory_space<vmem>>, vector<16x1xf32>,
    %c0_i32_14 = arith.constant 0 : i32
    %32 = arith.cmpi eq, %arg1, %c0_i32_14 : i32
    %33 = arith.extui %32 : i1 to i32
    %c0_i32_15 = arith.constant 0 : i32
    %34 = arith.cmpi ne, %33, %c0_i32_15 : i32
    scf.if %34 {
      %c0_16 = arith.constant 0 : index
      %c0_17 = arith.constant 0 : index
      %35 = vector.load %arg6[%c0_16, %c0_17] : memref<16x1xf32, #tpu.memory_space<vmem>>, vector<16x1xf32>
      %cst_18 = arith.constant dense<0.000000e+00> : vector<1xf32>
      %36 = vector.multi_reduction <add>, %35, %cst_18 [0] : vector<16x1xf32> to vector<1xf32>
      %37 = vector.shape_cast %36 : vector<1xf32> to vector<1x1xf32>
      %c0_19 = arith.constant 0 : index
      %c0_20 = arith.constant 0 : index
      %38 = vector.load %arg5[%c0_19, %c0_20] : memref<1x1xf32, #tpu.memory_space<vmem>>, vector<1x1xf32>
      tpu.vector_store %arg5[%c0_19, %c0_20], %37 {strides = array<i32>} : memref<1x1xf32, #tpu.memory_space<vmem>>, vector<1x1xf32>,
    } else {
    }
    return
  }
  func.func @transform_0(%arg0: i32, %arg1: i32) -> (i32, i32) {
    %c1_i32 = arith.constant 1 : i32
    %0 = arith.muli %arg0, %c1_i32 : i32
    %1 = arith.addi %0, %arg1 : i32
    %c0_i32 = arith.constant 0 : i32
    %2 = arith.minsi %1, %c0_i32 : i32
    %c0_i32_0 = arith.constant 0 : i32
    %c0_i32_1 = arith.constant 0 : i32
    return %2, %c0_i32_0 : i32, i32
  }
  func.func @transform_1(%arg0: i32, %arg1: i32) -> (i32, i32) {
    %c1_i32 = arith.constant 1 : i32
    %0 = arith.muli %arg0, %c1_i32 : i32
    %1 = arith.addi %0, %arg1 : i32
    %c0_i32 = arith.constant 0 : i32
    %2 = arith.minsi %1, %c0_i32 : i32
    %c0_i32_0 = arith.constant 0 : i32
    %c0_i32_1 = arith.constant 0 : i32
    return %2, %c0_i32_0 : i32, i32
  }
  func.func @transform_2(%arg0: i32, %arg1: i32) -> (i32, i32) {
    %c1_i32 = arith.constant 1 : i32
    %0 = arith.muli %arg0, %c1_i32 : i32
    %1 = arith.addi %0, %arg1 : i32
    %c0_i32 = arith.constant 0 : i32
    %2 = arith.minsi %1, %c0_i32 : i32
    %c0_i32_0 = arith.constant 0 : i32
    %c0_i32_1 = arith.constant 0 : i32
    return %2, %c0_i32_0 : i32, i32
  }
  func.func @transform_3(%arg0: i32, %arg1: i32) -> (i32, i32) {
    %c0_i32 = arith.constant 0 : i32
    %c0_i32_0 = arith.constant 0 : i32
    return %arg0, %c0_i32 : i32, i32
  }
}

</mosaic_0001>

<bundles_post_ra>
// kernel: tpu_custom_call.1
= control target key start
LH: loop header
LB: loop body
LE: loop exit
PB: predicated region body
PF: predicated region fallthrough
CT: control target
= control target key end

     0   :  { %8 = vsyncpa [#allocation4], 0  ;;  %s312_s0 = inlined_call_operand.hbm [shape: f32[16,128], index: 0, kind: input, shape index: {}]   ;;  %s313_s1 = inlined_call_operand.hbm [shape: f32[16,128], index: 1, kind: input, shape index: {}]   ;;  %s314_s2 = inlined_call_operand.hbm [shape: f32[16,128], index: 2, kind: input, shape index: {}]   ;;  %s315_s3 = inlined_call_operand.hbm [shape: f32[1,1], index: 3, kind: output, shape index: {}]  }
   0x1   :  { %9 = vsyncpa [#allocation7], 0 }
   0x2   :  { %10 = vsyncpa [#allocation5], 0  ;;  %s267_s12 = smov [#allocation6]   ;;  %s268_s14 = smov [#allocation3]  }
   0x3   :  { %s40_s13 = sshll.u32 %s267_s12, 4  ;;  %s22_s15 = sshll.u32 %s268_s14, 4  ;;  %s41_s13 = int_to_ptr.vmem [resolvable:$true] %s40_s13  ;;  %s23_s15 = int_to_ptr.vmem [resolvable:$true] %s22_s15 }
   0x4   :  { %s189_s16 = scalar_lea.vmem %s41_s13, 256  ;;  %p194_p1 = scmp.lt.s32.totalorder %s41_s13, %s41_s13 }
   0x5   :  { %p190_p0 = scmp.ne.s32.totalorder %s41_s13, %s189_s16  ;;  %p195_p2 = scmp.lt.s32.totalorder %s189_s16, %s189_s16 }
   0x7   :  { %p196_p3 = por %p195_p2, %p194_p1 }
   0x9   :  { %p197_p4 = pnand %p196_p3, %p190_p0 }
   0xb   :  { %200 = shalt.err (!%p197_p4)
}
   0xc   :  { %s269_s17 = smov 128   ;;  %s270_s18 = smov 8  }
   0xd   :  { %46 = dma.hbm_to_vmem [thread:$0]  %s313_s1, 256, %s41_s13, [#allocation7], %s269_s17, %s269_s17, %s270_s18  }
   0xe   :  { %s209_s21 = scalar_lea.vmem %s23_s15, 256  ;;  %p214_p6 = scmp.lt.s32.totalorder %s23_s15, %s23_s15 }
   0xf   :  { %p210_p5 = scmp.ne.s32.totalorder %s23_s15, %s209_s21  ;;  %p215_p7 = scmp.lt.s32.totalorder %s209_s21, %s209_s21 }
  0x11   :  { %p216_p8 = por %p215_p7, %p214_p6 }
  0x13   :  { %p217_p9 = pnand %p216_p8, %p210_p5 }
  0x15   :  { %220 = shalt.err (!%p217_p9)
}
  0x16   :  { %28 = dma.hbm_to_vmem [thread:$0]  %s312_s0, 256, %s23_s15, [#allocation4], %s269_s17, %s269_s17, %s270_s18  }
  0x17   :  { %s271_s24 = smov [#allocation8]  }
  0x18   :  { %s58_s25 = sshll.u32 %s271_s24, 4  ;;  %s59_s25 = int_to_ptr.vmem [resolvable:$true] %s58_s25 }
  0x19   :  { %s229_s26 = scalar_lea.vmem %s59_s25, 256  ;;  %p234_p11 = scmp.lt.s32.totalorder %s59_s25, %s59_s25 }
  0x1a   :  { %p230_p10 = scmp.ne.s32.totalorder %s59_s25, %s229_s26  ;;  %p235_p12 = scmp.lt.s32.totalorder %s229_s26, %s229_s26 }
  0x1c   :  { %p236_p13 = por %p235_p12, %p234_p11 }
  0x1e   :  { %p237_p0 = pnand %p236_p13, %p230_p10 }
  0x20   :  { %240 = shalt.err (!%p237_p0)
}
  0x21   :  { %64 = dma.hbm_to_vmem [thread:$0]  %s314_s2, 256, %s59_s25, [#allocation7], %s269_s17, %s269_s17, %s270_s18  }
  0x22   :  { %261 = dma.done.wait [#allocation4], 256  }
  0x23   :  { %262 = vsyncadd [#allocation4], 4294967040 }
  0x24   :  { %263 = dma.done.wait [#allocation7], 512  }
  0x25   :  { %264 = vsyncadd [#allocation7], 4294966784  ;;  %vm90_vm0 = vcmask 7168   ;;  %v272_v0 = vmov 0.0   ;;  %v93_v1 = vld [vmem:[#allocation3] sm:$0xff]  ;;  %v95_v2 = vld [vmem:[#allocation6] sm:$0xff] }
  0x26   :  { %91 = vst.msk [vmem:[#allocation2] sm:$0xff] %vm90_vm0, %v272_v0  ;;  %92 = vst.msk [vmem:[#allocation2 + $0x8] sm:$0xff] %vm90_vm0, %v272_v0  ;;  %v97_v3 = vld [vmem:[#allocation8] sm:$0xff]  ;;  %v99_v4 = vsub.f32 %v93_v1, %v95_v2  ;;  %v94_v6 = vld [vmem:[#allocation3 + $0x8] sm:$0xff]  ;;  %s273_s0 = smov [#allocation9]   ;;  %vm150_vm1 = vcmask 0  }
  0x27   :  { %v103_v5 = vsub.f32 %v93_v1, %v97_v3  ;;  %v96_v7 = vld [vmem:[#allocation6 + $0x8] sm:$0xff]  ;;  %v98_v8 = vld [vmem:[#allocation8 + $0x8] sm:$0xff]  ;;  %s158_s2 = sshll.u32 %s273_s0, 4  ;;  %s159_s2 = int_to_ptr.vmem [resolvable:$true] %s158_s2 }
  0x28   :  { %v100_v9 = vsub.f32 %v94_v6, %v96_v7  ;;  %v104_v10 = vsub.f32 %v94_v6, %v98_v8  ;;  %v101_v11 = vmul.f32 %v99_v4, %v99_v4  ;;  %s241_s28 = scalar_lea.vmem %s159_s2, 16  ;;  %s245_s29 = scalar_lea.vmem %s159_s2, 32 }
  0x29   :  { %v105_v12 = vmul.f32 %v103_v5, %v103_v5  ;;  %p242_p1 = scmp.ne.s32.totalorder %s159_s2, %s241_s28  ;;  %p246_p2 = scmp.lt.s32.totalorder %s159_s2, %s159_s2 }
  0x2a   :  { %v102_v13 = vmul.f32 %v100_v9, %v100_v9  ;;  %v106_v14 = vmul.f32 %v104_v10, %v104_v10  ;;  %p247_p3 = scmp.lt.s32.totalorder %s245_s29, %s241_s28 }
  0x2b   :  { %v107_v15 = vsub.f32 %v101_v11, %v105_v12 }
  0x2c   :  { %v108_v16 = vsub.f32 %v102_v13, %v106_v14  ;;  %p248_p4 = por %p247_p3, %p246_p2 }
  0x2d   :  { %109 = vadd.xlane.f32.xlu0 %v107_v15  ;;  %v125_v19 = vld [vmem:[#allocation2] sm:$0xff]  ;;  %v126_v24 = vld [vmem:[#allocation2 + $0x8] sm:$0xff] }
  0x2e   :  { %p249_p5 = pnand %p248_p4, %p242_p1 }
  0x31   :  { %111 = vadd.xlane.f32.xlu0 %v108_v16 }
  0xb6   :  { %v110_v17 = vpop.xlane.xlu0 %109 }
  0xb7   :  { %v113_v18 = vadd.f32 1.0, %v110_v17 }
  0xb9   :  { %v115_v20 = vmax.f32 %v113_v18, 0.0 }
  0xba   :  { %v112_v21 = vpop.xlane.xlu0 %111 }
  0xbb   :  { %v131_v22 = vadd.f32 %v125_v19, %v115_v20  ;;  %v114_v23 = vadd.f32 1.0, %v112_v21 }
  0xbd   :  { %134 = vst.msk [vmem:[#allocation2] sm:$0xff] %vm90_vm0, %v131_v22  ;;  %v116_v25 = vmax.f32 %v114_v23, 0.0 }
  0xbf   :  { %v132_v26 = vadd.f32 %v126_v24, %v116_v25 }
  0xc1   :  { %135 = vst.msk [vmem:[#allocation2 + $0x8] sm:$0xff] %vm90_vm0, %v132_v26 }
  0xc4   :  { %v139_v27 = vld [vmem:[#allocation2] sm:$0xff] }
  0xc5   :  { %v141_v29 = vsel %vm90_vm0, %v139_v27, 0.0 }
  0xc8   :  { %v140_v28 = vld [vmem:[#allocation2 + $0x8] sm:$0xff] }
  0xc9   :  { %v142_v30 = vsel %vm90_vm0, %v140_v28, 0.0 }
  0xca   :  { %v143_v31 = vadd.f32 %v142_v30, %v141_v29 }
  0xcc   :  { %v144_v32 = vrot.slane %v143_v31, 4 }
  0xce   :  { %v145_v33 = vadd.f32 %v144_v32, %v143_v31 }
  0xd0   :  { %v146_v34 = vrot.slane %v145_v33, 2 }
  0xd2   :  { %v147_v35 = vadd.f32 %v146_v34, %v145_v33 }
  0xd4   :  { %v148_v36 = vrot.slane %v147_v35, 1 }
  0xd6   :  { %v149_v37 = vadd.f32 %v148_v36, %v147_v35 }
  0xd8   :  { %151 = vst.msk [vmem:[#allocation9] sm:$0x1] %vm150_vm1, %v149_v37 }
  0xd9   :  { %252 = shalt.err (!%p249_p5)
}
  0xda   :  { %161 = dma.vmem_to_hbm [thread:$0]  %s159_s2, 16, %s315_s3, [#allocation5]  }
  0xdb   :  { %265 = dma.done.wait [#allocation5], 16  }
  0xdc   :  { %266 = vsyncadd [#allocation5], 4294967280 }
  0xdd   :  { %165 = vsyncpa [#allocation4], 1 }
  0xde   :  { %166 = vsyncpa [#allocation7], 1 }
  0xdf   :  { %167 = vsyncpa [#allocation5], 1 }

</bundles_post_ra>
